<compile_context>
chip_gen: v7x
topology: tpu7x:2x2x1
jax: 0.10.0
libtpu: 0.0.40
codegen_flags: <defaults>
</compile_context>

<pallas_src>
import functools

import jax
import jax.numpy as jnp
from jax.experimental import pallas as pl
from jax.experimental.pallas import tpu as pltpu

INPUT_DIM = 256
HL1 = 256
BN_EPS = 1e-5


def _round_up(n, m):
    return ((n + m - 1) // m) * m


def _vmem_budget_bytes():
    """Generation-aware scoped-VMEM budget (leave headroom below physical)."""
    try:
        cap = pltpu.get_tpu_info().vmem_capacity_bytes
    except Exception:
        cap = 64 * 1024 * 1024          # conservative: v7x per-TensorCore VMEM
    return max(32 * 1024 * 1024, (int(cap) * 3) // 4)


def _pick_block_rows(batch):
    if batch <= 2048:
        return _round_up(batch, 8)      # single tile
    for tb in (2048, 1024, 512):
        if batch % tb == 0:
            return tb
    return 512                          # large non-divisible batch: padded tail


def _fused_vmem_bytes(padded_batch, tb):
    f32 = 4
    return (padded_batch * HL1 * f32        # full-batch y scratch
            + 2 * tb * INPUT_DIM * f32      # x tiles (double-buffered)
            + 2 * tb * HL1 * f32            # out tiles (double-buffered)
            + 2 * INPUT_DIM * HL1 * f32     # W^T (budget 2x)
            + 32 * HL1 * f32)               # small scratches + gamma/beta


# ---------------------------------------------------------------------------
# Single-call fused path: grid = (phase, batch-tile), y kept in VMEM.
# ---------------------------------------------------------------------------
def _fused_kernel(x_ref, wt_ref, gb_ref, o_ref,
                  y_buf, sum_ref, ssq_ref, scale_ref, shift_ref,
                  *, batch_size, block_rows):
    phase = pl.program_id(0)            # 0: matmul + stats, 1: normalize + ReLU
    tile = pl.program_id(1)
    start = pl.multiple_of(tile * block_rows, 8)

    @pl.when(phase == 0)
    def _stats():
        @pl.when(tile == 0)
        def _init():
            sum_ref[...] = jnp.zeros_like(sum_ref)
            ssq_ref[...] = jnp.zeros_like(ssq_ref)

        # Bias-free Linear: the bias cancels exactly under batch-stat BatchNorm.
        y = jnp.dot(x_ref[...], wt_ref[...], preferred_element_type=jnp.float32)
        y_buf[pl.ds(start, block_rows), :] = y
        # vreg-shaped partials: pure VALU adds, no per-step cross-sublane reduce.
        y3 = y.reshape(block_rows // 8, 8, HL1)
        sum_ref[...] += jnp.sum(y3, axis=0)
        ssq_ref[...] += jnp.sum(y3 * y3, axis=0)

    @pl.when(phase == 1)
    def _normalize():
        @pl.when(tile == 0)
        def _finalize_stats():
            inv_b = jnp.float32(1.0 / batch_size)
            s = jnp.sum(sum_ref[...], axis=0, keepdims=True)    # (1, HL1)
            sq = jnp.sum(ssq_ref[...], axis=0, keepdims=True)
            mean = s * inv_b
            var = sq * inv_b - mean * mean                      # biased variance
            gb = gb_ref[...]                                    # [gamma; beta]
            scale = gb[0:1, :] * jax.lax.rsqrt(var + BN_EPS)
            scale_ref[...] = scale
            shift_ref[...] = gb[1:2, :] - mean * scale

        y = y_buf[pl.ds(start, block_rows), :]
        o_ref[...] = jnp.maximum(
            y * scale_ref[...] + shift_ref[...], 0.0).astype(o_ref.dtype)


def _fused_forward(x_pad, wt, gb, batch, tb, vmem_limit):
    padded_batch = x_pad.shape[0]
    nb = padded_batch // tb
    kernel = functools.partial(_fused_kernel, batch_size=batch, block_rows=tb)
    return pl.pallas_call(
        kernel,
        out_shape=jax.ShapeDtypeStruct((padded_batch, HL1), jnp.float32),
        grid=(2, nb),
        in_specs=[
            # x streamed during phase 0; frozen at the last block during phase 1
            # so the pipeline issues no x DMAs while normalizing.
            pl.BlockSpec((tb, INPUT_DIM),
                         lambda p, b: ((1 - p) * b + p * (nb - 1), 0)),
            pl.BlockSpec((INPUT_DIM, HL1), lambda p, b: (0, 0)),   # W^T resident
            pl.BlockSpec((2, HL1), lambda p, b: (0, 0)),           # gamma/beta
        ],
        # All phase-0 steps alias output block 0. o_ref is never written during
        # phase 0, and the block index only changes AFTER (phase=1, tile=0) has
        # fully overwritten block 0, so no garbage tile is ever written back and
        # each output tile is written back exactly once.
        out_specs=pl.BlockSpec((tb, HL1), lambda p, b: (p * b, 0)),
        scratch_shapes=[
            pltpu.VMEM((padded_batch, HL1), jnp.float32),  # y_buf
            pltpu.VMEM((8, HL1), jnp.float32),             # per-sublane sum
            pltpu.VMEM((8, HL1), jnp.float32),             # per-sublane ssq
            pltpu.VMEM((1, HL1), jnp.float32),             # folded scale
            pltpu.VMEM((1, HL1), jnp.float32),             # folded shift
        ],
        compiler_params=pltpu.CompilerParams(
            # Phase 1 depends on the cross-tile reduction from phase 0, so the
            # grid must be sequential in this single-call design.
            dimension_semantics=("arbitrary", "arbitrary"),
            vmem_limit_bytes=vmem_limit,
        ),
    )(x_pad, wt, gb)


# ---------------------------------------------------------------------------
# Two-call path: used when y does not fit in VMEM; batch axis is `parallel`
# (megacore-shardable on v7x). y is materialized to HBM instead of recomputed.
# ---------------------------------------------------------------------------
def _stats_kernel(x_ref, wt_ref, y_ref, psum_ref, pssq_ref):
    y = jnp.dot(x_ref[...], wt_ref[...], preferred_element_type=jnp.float32)
    y_ref[...] = y
    y3 = y.reshape(-1, 8, HL1)
    psum_ref[...] = jnp.sum(y3, axis=0)[None]
    pssq_ref[...] = jnp.sum(y3 * y3, axis=0)[None]


def _norm_kernel(y_ref, ss_ref, o_ref):
    ss = ss_ref[...]                                    # (2, HL1): [scale; shift]
    o_ref[...] = jnp.maximum(
        y_ref[...] * ss[0:1, :] + ss[1:2, :], 0.0).astype(o_ref.dtype)


def _two_call_forward(x_pad, wt, gamma, beta, batch, tb, vmem_limit):
    padded_batch = x_pad.shape[0]
    nb = padded_batch // tb

    y, psum, pssq = pl.pallas_call(
        _stats_kernel,
        out_shape=(
            jax.ShapeDtypeStruct((padded_batch, HL1), jnp.float32),
            jax.ShapeDtypeStruct((nb, 8, HL1), jnp.float32),
            jax.ShapeDtypeStruct((nb, 8, HL1), jnp.float32),
        ),
        grid=(nb,),
        in_specs=[
            pl.BlockSpec((tb, INPUT_DIM), lambda b: (b, 0)),
            pl.BlockSpec((INPUT_DIM, HL1), lambda b: (0, 0)),
        ],
        out_specs=(
            pl.BlockSpec((tb, HL1), lambda b: (b, 0)),
            pl.BlockSpec((1, 8, HL1), lambda b: (b, 0, 0)),
            pl.BlockSpec((1, 8, HL1), lambda b: (b, 0, 0)),
        ),
        compiler_params=pltpu.CompilerParams(
            dimension_semantics=("parallel",),
            vmem_limit_bytes=vmem_limit,
        ),
    )(x_pad, wt)

    # Tiny cross-block combine + scale/shift folding in plain JAX.
    inv_b = jnp.float32(1.0 / batch)
    mean = jnp.sum(psum, axis=(0, 1)) * inv_b
    var = jnp.sum(pssq, axis=(0, 1)) * inv_b - mean * mean
    scale = gamma * jax.lax.rsqrt(var + BN_EPS)
    shift = beta - mean * scale
    ss = jnp.stack([scale, shift], axis=0)              # (2, HL1)

    return pl.pallas_call(
        _norm_kernel,
        out_shape=jax.ShapeDtypeStruct((padded_batch, HL1), jnp.float32),
        grid=(nb,),
        in_specs=[
            pl.BlockSpec((tb, HL1), lambda b: (b, 0)),
            pl.BlockSpec((2, HL1), lambda b: (0, 0)),
        ],
        out_specs=pl.BlockSpec((tb, HL1), lambda b: (b, 0)),
        compiler_params=pltpu.CompilerParams(
            dimension_semantics=("parallel",),
            vmem_limit_bytes=vmem_limit,
        ),
    )(y, ss)


# ---------------------------------------------------------------------------
# Public wrapper
# ---------------------------------------------------------------------------
@functools.partial(jax.jit, static_argnames=("block_rows", "strategy"))
def fp_forward(x, w, gamma, beta, *, block_rows=None, strategy="auto"):
    """FPClass forward: ReLU(BatchNorm1d(Linear(x))) with training-mode (batch)
    statistics. x: (B, 256) f32; w: (256, 256) in PyTorch (out, in) layout;
    gamma/beta: (256,). The Linear bias is omitted: it cancels exactly under
    batch-stat BatchNorm, so the output matches the biased module."""
    batch, in_dim = x.shape
    if in_dim != INPUT_DIM:
        raise ValueError(f"expected x with {INPUT_DIM} features, got {in_dim}")
    if batch < 2:
        raise ValueError("training-mode BatchNorm1d requires batch >= 2")

    tb = block_rows if block_rows is not None else _pick_block_rows(batch)
    if tb % 8 != 0:
        raise ValueError("block_rows must be a multiple of 8")

    padded_batch = _round_up(batch, tb)
    pad = padded_batch - batch
    # Zero-padded rows (with the bias-free matmul) contribute exactly 0 to the
    # feature sums / sums-of-squares, so batch statistics stay correct; padded
    # output rows are sliced off below.
    x_pad = jnp.pad(x, ((0, pad), (0, 0))) if pad else x

    # One-time tiny HBM transpose so the kernels contract a standard (K, N) RHS
    # (no per-grid-step in-kernel weight transpose).
    wt = w.T

    budget = _vmem_budget_bytes()
    if strategy == "auto":
        strategy = ("fused" if _fused_vmem_bytes(padded_batch, tb) <= budget
                    else "two_call")

    if strategy == "fused":
        gb = jnp.stack([gamma, beta], axis=0)            # (2, HL1)
        out = _fused_forward(x_pad, wt, gb, batch, tb, budget)
    elif strategy == "two_call":
        out = _two_call_forward(x_pad, wt, gamma, beta, batch, tb, budget)
    else:
        raise ValueError(f"unknown strategy {strategy!r}")

    return out[:batch] if pad else out


def init_params(key):
    """nn.Linear(256,256) / nn.BatchNorm1d(256)-shaped params. Non-default
    gamma/beta exercise the folded scale/shift path numerically."""
    k_w, k_b, k_g, k_be = jax.random.split(key, 4)
    bound = 1.0 / jnp.sqrt(jnp.float32(INPUT_DIM))
    w = jax.random.uniform(k_w, (HL1, INPUT_DIM), jnp.float32, -bound, bound)
    b = jax.random.uniform(k_b, (HL1,), jnp.float32, -bound, bound)
    gamma = jax.random.uniform(k_g, (HL1,), jnp.float32, 0.5, 1.5)
    beta = 0.1 * jax.random.normal(k_be, (HL1,), jnp.float32)
    return w, b, gamma, beta


def reference(x, w, b, gamma, beta):
    """Plain-JAX FPClass forward (training-mode BN), bias included."""
    y = x @ w.T + b
    mean = y.mean(axis=0, keepdims=True)
    var = ((y - mean) ** 2).mean(axis=0, keepdims=True)
    return jnp.maximum((y - mean) / jnp.sqrt(var + BN_EPS) * gamma + beta, 0.0)


if __name__ == "__main__":
    key = jax.random.PRNGKey(0)
    k_x1, k_x2, k_x3, k_p = jax.random.split(key, 4)
    w, b, gamma, beta = init_params(k_p)

    # Multi-tile fused path: batch 32, 8-row tiles -> grid (2, 4).
    x = jax.random.normal(k_x1, (32, INPUT_DIM), jnp.float32)
    out = fp_forward(x, w, gamma, beta, block_rows=8)
    jax.block_until_ready(out)
    ref = reference(x, w, b, gamma, beta)
    assert out.shape == (32, HL1)
    assert jnp.allclose(out, ref, atol=5e-4, rtol=5e-4), \
        f"fused multi-tile max abs err = {float(jnp.max(jnp.abs(out - ref)))}"

    # Non-multiple-of-8 batch: exercises the zero-pad + output-slice path.
    x_odd = jax.random.normal(k_x2, (19, INPUT_DIM), jnp.float32)
    out_odd = fp_forward(x_odd, w, gamma, beta)
    jax.block_until_ready(out_odd)
    ref_odd = reference(x_odd, w, b, gamma, beta)
    assert out_odd.shape == (19, HL1)
    assert jnp.allclose(out_odd, ref_odd, atol=5e-4, rtol=5e-4), \
        f"padded-batch max abs err = {float(jnp.max(jnp.abs(out_odd - ref_odd)))}"

    # Two-call (parallel batch axis) path.
    x2 = jax.random.normal(k_x3, (32, INPUT_DIM), jnp.float32)
    out2 = fp_forward(x2, w, gamma, beta, block_rows=16, strategy="two_call")
    jax.block_until_ready(out2)
    ref2 = reference(x2, w, b, gamma, beta)
    assert jnp.allclose(out2, ref2, atol=5e-4, rtol=5e-4), \
        f"two-call max abs err = {float(jnp.max(jnp.abs(out2 - ref2)))}"

    print("KERNEL_OK")
</pallas_src>

<mosaic_0001>
module attributes {stable_mosaic.version = 11 : i64} {
  func.func @_fused_kernel(%arg0: i32, %arg1: i32, %arg2: memref<8x256xf32, #tpu.memory_space<vmem>>, %arg3: memref<256x256xf32, #tpu.memory_space<vmem>>, %arg4: memref<2x256xf32, #tpu.memory_space<vmem>>, %arg5: memref<8x256xf32, #tpu.memory_space<vmem>>, %arg6: memref<32x256xf32, #tpu.memory_space<vmem>>, %arg7: memref<8x256xf32, #tpu.memory_space<vmem>>, %arg8: memref<8x256xf32, #tpu.memory_space<vmem>>, %arg9: memref<1x256xf32, #tpu.memory_space<vmem>>, %arg10: memref<1x256xf32, #tpu.memory_space<vmem>>) attributes {dimension_semantics = [#tpu.dimension_semantics<arbitrary>, #tpu.dimension_semantics<arbitrary>], iteration_bounds = array<i64: 2, 4>, scalar_prefetch = 0 : i64, scratch_operands = 5 : i64, tpu.core_type = #tpu.core_type<tc>, window_params = [{transform_indices = @transform_0, window_bounds = array<i64: 8, 256>}, {pipeline_mode = #tpu.pipeline_mode<synchronous>, transform_indices = @transform_1, window_bounds = array<i64: 256, 256>}, {pipeline_mode = #tpu.pipeline_mode<synchronous>, transform_indices = @transform_2, window_bounds = array<i64: 2, 256>}, {transform_indices = @transform_3, window_bounds = array<i64: 8, 256>}]} {
    %c8_i32 = arith.constant 8 : i32
    %0 = arith.muli %arg1, %c8_i32 : i32
    %1 = tpu.assume_multiple %0, 8 : i32
    %c0_i32 = arith.constant 0 : i32
    %2 = arith.cmpi eq, %arg0, %c0_i32 : i32
    %3 = arith.extui %2 : i1 to i32
    %c0_i32_0 = arith.constant 0 : i32
    %4 = arith.cmpi ne, %3, %c0_i32_0 : i32
    scf.if %4 {
      %c0_i32_2 = arith.constant 0 : i32
      %8 = arith.cmpi eq, %arg1, %c0_i32_2 : i32
      %9 = arith.extui %8 : i1 to i32
      %c0_i32_3 = arith.constant 0 : i32
      %10 = arith.cmpi ne, %9, %c0_i32_3 : i32
      scf.if %10 {
        %cst_18 = arith.constant 0.000000e+00 : f32
        %26 = vector.broadcast %cst_18 : f32 to vector<8x256xf32>
        %c0_19 = arith.constant 0 : index
        %c0_20 = arith.constant 0 : index
        %27 = vector.load %arg7[%c0_19, %c0_20] : memref<8x256xf32, #tpu.memory_space<vmem>>, vector<8x256xf32>
        tpu.vector_store %arg7[%c0_19, %c0_20], %26 {strides = array<i32>} : memref<8x256xf32, #tpu.memory_space<vmem>>, vector<8x256xf32>,
        %cst_21 = arith.constant 0.000000e+00 : f32
        %28 = vector.broadcast %cst_21 : f32 to vector<8x256xf32>
        %c0_22 = arith.constant 0 : index
        %c0_23 = arith.constant 0 : index
        %29 = vector.load %arg8[%c0_22, %c0_23] : memref<8x256xf32, #tpu.memory_space<vmem>>, vector<8x256xf32>
        tpu.vector_store %arg8[%c0_22, %c0_23], %28 {strides = array<i32>} : memref<8x256xf32, #tpu.memory_space<vmem>>, vector<8x256xf32>,
      } else {
      }
      %c0 = arith.constant 0 : index
      %c0_4 = arith.constant 0 : index
      %11 = vector.load %arg2[%c0, %c0_4] : memref<8x256xf32, #tpu.memory_space<vmem>>, vector<8x256xf32>
      %c0_5 = arith.constant 0 : index
      %c0_6 = arith.constant 0 : index
      %12 = vector.load %arg3[%c0_5, %c0_6] : memref<256x256xf32, #tpu.memory_space<vmem>>, vector<256x256xf32>
      %cst = arith.constant dense<0.000000e+00> : vector<8x256xf32>
      %13 = tpu.matmul %11, %12, %cst {dimension_numbers = #tpu.dot_dimension_numbers<[1], [0], [0], [1], [0, 0, 1, 1], [], []>} : vector<8x256xf32>, vector<256x256xf32>, vector<8x256xf32> -> vector<8x256xf32>
      %14 = arith.index_cast %1 : i32 to index
      %c0_7 = arith.constant 0 : index
      %15 = vector.load %arg6[%14, %c0_7] : memref<32x256xf32, #tpu.memory_space<vmem>>, vector<8x256xf32>
      tpu.vector_store %arg6[%14, %c0_7], %13 {strides = array<i32>} : memref<32x256xf32, #tpu.memory_space<vmem>>, vector<8x256xf32>,
      %16 = vector.shape_cast %13 : vector<8x256xf32> to vector<1x8x256xf32>
      %c0_8 = arith.constant 0 : index
      %c0_9 = arith.constant 0 : index
      %17 = vector.load %arg7[%c0_8, %c0_9] : memref<8x256xf32, #tpu.memory_space<vmem>>, vector<8x256xf32>
      %cst_10 = arith.constant dense<0.000000e+00> : vector<8x256xf32>
      %18 = vector.multi_reduction <add>, %16, %cst_10 [0] : vector<1x8x256xf32> to vector<8x256xf32>
      %19 = arith.addf %17, %18 : vector<8x256xf32>
      %c0_11 = arith.constant 0 : index
      %c0_12 = arith.constant 0 : index
      %20 = vector.load %arg7[%c0_11, %c0_12] : memref<8x256xf32, #tpu.memory_space<vmem>>, vector<8x256xf32>
      tpu.vector_store %arg7[%c0_11, %c0_12], %19 {strides = array<i32>} : memref<8x256xf32, #tpu.memory_space<vmem>>, vector<8x256xf32>,
      %c0_13 = arith.constant 0 : index
      %c0_14 = arith.constant 0 : index
      %21 = vector.load %arg8[%c0_13, %c0_14] : memref<8x256xf32, #tpu.memory_space<vmem>>, vector<8x256xf32>
      %22 = arith.mulf %16, %16 : vector<1x8x256xf32>
      %cst_15 = arith.constant dense<0.000000e+00> : vector<8x256xf32>
      %23 = vector.multi_reduction <add>, %22, %cst_15 [0] : vector<1x8x256xf32> to vector<8x256xf32>
      %24 = arith.addf %21, %23 : vector<8x256xf32>
      %c0_16 = arith.constant 0 : index
      %c0_17 = arith.constant 0 : index
      %25 = vector.load %arg8[%c0_16, %c0_17] : memref<8x256xf32, #tpu.memory_space<vmem>>, vector<8x256xf32>
      tpu.vector_store %arg8[%c0_16, %c0_17], %24 {strides = array<i32>} : memref<8x256xf32, #tpu.memory_space<vmem>>, vector<8x256xf32>,
    } else {
    }
    %c1_i32 = arith.constant 1 : i32
    %5 = arith.cmpi eq, %arg0, %c1_i32 : i32
    %6 = arith.extui %5 : i1 to i32
    %c0_i32_1 = arith.constant 0 : i32
    %7 = arith.cmpi ne, %6, %c0_i32_1 : i32
    scf.if %7 {
      %c0_i32_2 = arith.constant 0 : i32
      %8 = arith.cmpi eq, %arg1, %c0_i32_2 : i32
      %9 = arith.extui %8 : i1 to i32
      %c0_i32_3 = arith.constant 0 : i32
      %10 = arith.cmpi ne, %9, %c0_i32_3 : i32
      scf.if %10 {
        %c0_10 = arith.constant 0 : index
        %c0_11 = arith.constant 0 : index
        %22 = vector.load %arg7[%c0_10, %c0_11] : memref<8x256xf32, #tpu.memory_space<vmem>>, vector<8x256xf32>
        %cst_12 = arith.constant dense<0.000000e+00> : vector<256xf32>
        %23 = vector.multi_reduction <add>, %22, %cst_12 [0] : vector<8x256xf32> to vector<256xf32>
        %24 = vector.shape_cast %23 : vector<256xf32> to vector<1x256xf32>
        %c0_13 = arith.constant 0 : index
        %c0_14 = arith.constant 0 : index
        %25 = vector.load %arg8[%c0_13, %c0_14] : memref<8x256xf32, #tpu.memory_space<vmem>>, vector<8x256xf32>
        %cst_15 = arith.constant dense<0.000000e+00> : vector<256xf32>
        %26 = vector.multi_reduction <add>, %25, %cst_15 [0] : vector<8x256xf32> to vector<256xf32>
        %27 = vector.shape_cast %26 : vector<256xf32> to vector<1x256xf32>
        %cst_16 = arith.constant 3.125000e-02 : f32
        %28 = vector.broadcast %cst_16 : f32 to vector<1x256xf32>
        %29 = arith.mulf %24, %28 : vector<1x256xf32>
        %cst_17 = arith.constant 3.125000e-02 : f32
        %30 = vector.broadcast %cst_17 : f32 to vector<1x256xf32>
        %31 = arith.mulf %27, %30 : vector<1x256xf32>
        %32 = arith.mulf %29, %29 : vector<1x256xf32>
        %33 = arith.subf %31, %32 : vector<1x256xf32>
        %c0_18 = arith.constant 0 : index
        %c0_19 = arith.constant 0 : index
        %34 = vector.load %arg4[%c0_18, %c0_19] : memref<2x256xf32, #tpu.memory_space<vmem>>, vector<2x256xf32>
        %35 = vector.extract_strided_slice %34 {offsets = [0, 0], sizes = [1, 256], strides = [1, 1]} : vector<2x256xf32> to vector<1x256xf32>
        %cst_20 = arith.constant 9.99999974E-6 : f32
        %36 = vector.broadcast %cst_20 : f32 to vector<1x256xf32>
        %37 = arith.addf %33, %36 : vector<1x256xf32>
        %38 = math.rsqrt %37 : vector<1x256xf32>
        %39 = arith.mulf %35, %38 : vector<1x256xf32>
        %c0_21 = arith.constant 0 : index
        %c0_22 = arith.constant 0 : index
        %40 = vector.load %arg9[%c0_21, %c0_22] : memref<1x256xf32, #tpu.memory_space<vmem>>, vector<1x256xf32>
        tpu.vector_store %arg9[%c0_21, %c0_22], %39 {strides = array<i32>} : memref<1x256xf32, #tpu.memory_space<vmem>>, vector<1x256xf32>,
        %41 = vector.extract_strided_slice %34 {offsets = [1, 0], sizes = [1, 256], strides = [1, 1]} : vector<2x256xf32> to vector<1x256xf32>
        %42 = arith.mulf %29, %39 : vector<1x256xf32>
        %43 = arith.subf %41, %42 : vector<1x256xf32>
        %c0_23 = arith.constant 0 : index
        %c0_24 = arith.constant 0 : index
        %44 = vector.load %arg10[%c0_23, %c0_24] : memref<1x256xf32, #tpu.memory_space<vmem>>, vector<1x256xf32>
        tpu.vector_store %arg10[%c0_23, %c0_24], %43 {strides = array<i32>} : memref<1x256xf32, #tpu.memory_space<vmem>>, vector<1x256xf32>,
      } else {
      }
      %11 = arith.index_cast %1 : i32 to index
      %c0 = arith.constant 0 : index
      %12 = vector.load %arg6[%11, %c0] : memref<32x256xf32, #tpu.memory_space<vmem>>, vector<8x256xf32>
      %c0_4 = arith.constant 0 : index
      %c0_5 = arith.constant 0 : index
      %13 = vector.load %arg9[%c0_4, %c0_5] : memref<1x256xf32, #tpu.memory_space<vmem>>, vector<1x256xf32>
      %14 = vector.broadcast %13 : vector<1x256xf32> to vector<8x256xf32>
      %15 = arith.mulf %12, %14 : vector<8x256xf32>
      %c0_6 = arith.constant 0 : index
      %c0_7 = arith.constant 0 : index
      %16 = vector.load %arg10[%c0_6, %c0_7] : memref<1x256xf32, #tpu.memory_space<vmem>>, vector<1x256xf32>
      %17 = vector.broadcast %16 : vector<1x256xf32> to vector<8x256xf32>
      %18 = arith.addf %15, %17 : vector<8x256xf32>
      %cst = arith.constant 0.000000e+00 : f32
      %19 = vector.broadcast %cst : f32 to vector<8x256xf32>
      %20 = arith.maximumf %18, %19 : vector<8x256xf32>
      %c0_8 = arith.constant 0 : index
      %c0_9 = arith.constant 0 : index
      %21 = vector.load %arg5[%c0_8, %c0_9] : memref<8x256xf32, #tpu.memory_space<vmem>>, vector<8x256xf32>
      tpu.vector_store %arg5[%c0_8, %c0_9], %20 {strides = array<i32>} : memref<8x256xf32, #tpu.memory_space<vmem>>, vector<8x256xf32>,
    } else {
    }
    return
  }
  func.func @transform_0(%arg0: i32, %arg1: i32) -> (i32, i32) {
    %c1_i32 = arith.constant 1 : i32
    %0 = arith.subi %c1_i32, %arg0 : i32
    %1 = arith.muli %0, %arg1 : i32
    %c3_i32 = arith.constant 3 : i32
    %2 = arith.muli %arg0, %c3_i32 : i32
    %3 = arith.addi %1, %2 : i32
    %c0_i32 = arith.constant 0 : i32
    %c0_i32_0 = arith.constant 0 : i32
    return %3, %c0_i32 : i32, i32
  }
  func.func @transform_1(%arg0: i32, %arg1: i32) -> (i32, i32) {
    %c0_i32 = arith.constant 0 : i32
    %c0_i32_0 = arith.constant 0 : i32
    %c0_i32_1 = arith.constant 0 : i32
    return %c0_i32, %c0_i32_0 : i32, i32
  }
  func.func @transform_2(%arg0: i32, %arg1: i32) -> (i32, i32) {
    %c0_i32 = arith.constant 0 : i32
    %c0_i32_0 = arith.constant 0 : i32
    %c0_i32_1 = arith.constant 0 : i32
    return %c0_i32, %c0_i32_0 : i32, i32
  }
  func.func @transform_3(%arg0: i32, %arg1: i32) -> (i32, i32) {
    %0 = arith.muli %arg0, %arg1 : i32
    %c0_i32 = arith.constant 0 : i32
    %c0_i32_0 = arith.constant 0 : i32
    return %0, %c0_i32 : i32, i32
  }
}

</mosaic_0001>

<bundles_post_ra>
// kernel: fp_forward.1
= control target key start
LH: loop header
LB: loop body
LE: loop exit
PB: predicated region body
PF: predicated region fallthrough
CT: control target
= control target key end

     0   :  { %8 = vsyncpa [#allocation8], 0  ;;  %s1261_s0 = inlined_call_operand.vmem [shape: f32[32,256], index: 0, kind: input, shape index: {}]   ;;  %s1262_s1 = inlined_call_operand.vmem [shape: f32[256,256], index: 1, kind: input, shape index: {}]   ;;  %s1263_s2 = inlined_call_operand.vmem [shape: f32[2,256], index: 2, kind: input, shape index: {}]   ;;  %s1264_s3 = inlined_call_operand.hbm [shape: f32[32,256], index: 3, kind: output, shape index: {}]  }
   0x1   :  { %10 = vsyncpa [#allocation8 + $0x1], 0  ;;  %s915_s12 = smov 0   ;;  %s917_s13 = smov 0  }
   0x2   :  { %s919_s14 = smov 0   ;;  %s921_s15 = smov 0  }
   0x3   :  { %s923_s16 = smov 0   ;;  %s925_s17 = smov 0  }
   0x4   :  { %s927_s18 = smov 0   ;;  %s929_s19 = smov 0  }
   0x5 LB: > { %s627_s20 = sadd.s32 4294967295, %s889_s19   ;;  %s628_s21 = sadd.s32 4294967294, %s889_s19   ;;  %s889_s19 = sphi %s929_s19, %s16_s19   ;;  %s885_s18 = sphi %s927_s18, %s1275_s18   ;;  %s881_s17 = sphi %s925_s17, %s1274_s17   ;;  %s877_s16 = sphi %s923_s16, %s1273_s16   ;;  %s873_s15 = sphi %s921_s15, %s1272_s15   ;;  %s869_s14 = sphi %s919_s14, %s1271_s14   ;;  %s865_s13 = sphi %s917_s13, %s1270_s13   ;;  %s861_s12 = sphi %s915_s12, %s1269_s12  }
   0x6   : > { %s25_s22 = sadd.s32 1, %s881_s17  ;;  %s28_s23 = sadd.s32 1, %s885_s18 }
   0x7   : > { %p26_p0 = scmp.ge.s32.totalorder %s25_s22, 4  ;;  %s108_s24 = smul.u32 %s881_s17, %s885_s18 }
   0x8   : > { %p123_p1 = scmp.ne.s32.totalorder %s869_s14, %s865_s13  ;;  %p124_p2 = scmp.eq.s32.totalorder %s627_s20, 7 }
   0x9   : > { %s1277_s22 = smov (%p26_p0, %s25_s22), 0  ;;  %s1279_s23 = smov (!%p26_p0, %s28_s23), %s885_s18 }
   0xa   : > { %p129_p3 = scmp.ne.s32.totalorder %s865_s13, %s861_s12  ;;  %p30_p4 = scmp.ge.s32.totalorder %s1279_s23, 2 }
   0xb   : > { %p130_p5 = scmp.eq.s32.totalorder %s628_s21, 7  ;;  %p968_p6 = por %p124_p2, %p123_p1 }
   0xc   : > { %p631_p7 = scmp.ge.s32.totalorder %s889_s19, 1  ;;  %s1281_s23 = smov (%p30_p4, %s1279_s23), 0 }
   0xd   : > { %p975_p8 = por %p130_p5, %p129_p3  ;;  %p170_p9 = scmp.lt.s32.totalorder %s889_s19, 9 }
   0xe   : > { %s109_s27 = smul.u32 %s1281_s23, %s1277_s22  ;;  %s113_s29 = sadd.s32 1, %s869_s14 }
   0xf   : > { %p171_p10 = pnand %p631_p7, %p170_p9 }
  0x10   : > { %s110_s28 = ssub.s32 %s108_s24, %s109_s27  ;;  %s1265_s4 = sand.u32 (!%p171_p10), 1, %s865_s13  }
  0x11   : > { %p111_p11 = scmp.eq.s32.totalorder %s110_s28, 0  ;;  %174 = sbr.rel (%p171_p10) target bundleno = 429 (0x1ad), region = 32 }
  0x12   : > { %s198_s5 = ssub.s32 (!%p171_p10), 1, %s877_s16  ;;  %s632_s6 = sshll.u32 (!%p171_p10), %s1265_s4, 4 }
  0x13   : > { %s984_s30 = scalar_select %p111_p11, %s869_s14, %s113_s29  }
  0x14   : > { %s199_s7 = smul.u32 (!%p171_p10), %s873_s15, %s198_s5  ;;  %s635_s9 = sshll.u32 (!%p171_p10), %s873_s15, 3 }
  0x15   : > { %s200_s8 = smul.u32 (!%p171_p10), 3, %s877_s16  ;;  %s998_s27 = scalar_lea.vmem (!%p171_p10), [#allocation7], %s632_s6 }
  0x16   : > { %p636_p13 = scmp.ne.s32.totalorder (!%p171_p10), %s877_s16, 0 }
  0x17   : > { %s201_s10 = sadd.s32 (!%p171_p10), %s200_s8, %s199_s7 }
  0x18   : > { %p202_p12 = scmp.lt.s32.totalorder %s201_s10, 3  ;;  %216 = sbr.rel (%p636_p13) target bundleno = 323 (0x143), region = 36 }
  0x19   : > { %p637_p0 = scmp.ne.s32.totalorder (!%p636_p13), %s873_s15, 0 }
  0x1a   : > { %s1283_s10 = smov (!%p202_p12, %s201_s10), 3 }
  0x1b   : > { %s649_s11 = sshll.u32 %s1283_s10, 4 }
  0x1c   : > { %s996_s24 = scalar_lea.vmem %s1261_s0, %s649_s11 }
  0x1f   : > { %220 = sbr.rel (%p637_p0) target bundleno = 38 (0x26), region = 40  ;;  %v891_v0 = vmov (!%p637_p0), 0.0  }
  0x20   : > { %221 = vst [vmem:[#allocation3] sm:$0xff] (!%p637_p0), %v891_v0  ;;  %222 = vst [vmem:[#allocation3 + $0x8] sm:$0xff] (!%p637_p0), %v891_v0 }
  0x21   : > { %223 = vst [vmem:[#allocation4] sm:$0xff] (!%p637_p0), %v891_v0  ;;  %224 = vst [vmem:[#allocation4 + $0x8] sm:$0xff] (!%p637_p0), %v891_v0 }
  0x26 PF: > { %v228_v1 = vld [vmem:[%s1262_s1 + $0x8] sm:$0xff]  ;;  %v230_v2 = vld [vmem:[%s1262_s1 + $0x18] sm:$0xff]  ;;  %v227_v3 = vld [vmem:[%s1262_s1] sm:$0xff]  ;;  %s362_s11 = sshra.s32 %s635_s9, 3 }
  0x27   : > { %v653_v4 = vpack.c.bf16 %v230_v2, %v228_v1  ;;  %v229_v5 = vld [vmem:[%s1262_s1 + $0x10] sm:$0xff]  ;;  %v232_v6 = vld [vmem:[%s1262_s1 + $0x28] sm:$0xff]  ;;  %v234_v7 = vld [vmem:[%s1262_s1 + $0x38] sm:$0xff]  ;;  %s650_s20 = sshll.u32 %s362_s11, 4 }
  0x28   : > { %v655_v8 = vpack.c.bf16 %v229_v5, %v227_v3  ;;  %v657_v9 = vpack.c.bf16 %v234_v7, %v232_v6  ;;  %v231_v10 = vld [vmem:[%s1262_s1 + $0x20] sm:$0xff]  ;;  %v233_v11 = vld [vmem:[%s1262_s1 + $0x30] sm:$0xff]  ;;  %v236_v12 = vld [vmem:[%s1262_s1 + $0x48] sm:$0xff]  ;;  %s366_s4 = scalar_lea.vmem [#allocation2], %s650_s20 }
  0x29   : > { %654 = vmatprep.subr.bf16.mxu0 %v653_v4  ;;  %v238_v13 = vld [vmem:[%s1262_s1 + $0x58] sm:$0xff]  ;;  %v659_v14 = vpack.c.bf16 %v233_v11, %v231_v10  ;;  %v235_v16 = vld [vmem:[%s1262_s1 + $0x40] sm:$0xff]  ;;  %v237_v17 = vld [vmem:[%s1262_s1 + $0x50] sm:$0xff] }
  0x2a   : > { %656 = vmatpush1.bf16.msra.mxu0 %v655_v8  ;;  %v661_v15 = vpack.c.bf16 %v238_v13, %v236_v12  ;;  %v240_v18 = vld [vmem:[%s1262_s1 + $0x68] sm:$0xff]  ;;  %v242_v19 = vld [vmem:[%s1262_s1 + $0x78] sm:$0xff]  ;;  %v663_v20 = vpack.c.bf16 %v237_v17, %v235_v16  ;;  %v239_v22 = vld [vmem:[%s1262_s1 + $0x60] sm:$0xff] }
  0x2b   : > { %658 = vmatprep.subr.bf16.mxu0 %v657_v9  ;;  %v665_v21 = vpack.c.bf16 %v242_v19, %v240_v18  ;;  %v241_v23 = vld [vmem:[%s1262_s1 + $0x70] sm:$0xff]  ;;  %v244_v24 = vld [vmem:[%s1262_s1 + $0x88] sm:$0xff]  ;;  %v246_v25 = vld [vmem:[%s1262_s1 + $0x98] sm:$0xff] }
  0x2c   : > { %v667_v26 = vpack.c.bf16 %v241_v23, %v239_v22  ;;  %v669_v27 = vpack.c.bf16 %v246_v25, %v244_v24  ;;  %v243_v28 = vld [vmem:[%s1262_s1 + $0x80] sm:$0xff]  ;;  %v245_v29 = vld [vmem:[%s1262_s1 + $0x90] sm:$0xff]  ;;  %v248_v30 = vld [vmem:[%s1262_s1 + $0xa8] sm:$0xff] }
  0x2d   : > { %v250_v31 = vld [vmem:[%s1262_s1 + $0xb8] sm:$0xff]  ;;  %v671_v32 = vpack.c.bf16 %v245_v29, %v243_v28  ;;  %v247_v34 = vld [vmem:[%s1262_s1 + $0xa0] sm:$0xff]  ;;  %v249_v35 = vld [vmem:[%s1262_s1 + $0xb0] sm:$0xff] }
  0x2e   : > { %660 = vmatpush1.bf16.msra.mxu0 %v659_v14  ;;  %v673_v33 = vpack.c.bf16 %v250_v31, %v248_v30  ;;  %v252_v36 = vld [vmem:[%s1262_s1 + $0xc8] sm:$0xff]  ;;  %v254_v37 = vld [vmem:[%s1262_s1 + $0xd8] sm:$0xff]  ;;  %v675_v38 = vpack.c.bf16 %v249_v35, %v247_v34  ;;  %v251_v40 = vld [vmem:[%s1262_s1 + $0xc0] sm:$0xff] }
  0x2f   : > { %662 = vmatprep.subr.bf16.mxu0 %v661_v15  ;;  %v677_v39 = vpack.c.bf16 %v254_v37, %v252_v36  ;;  %v253_v41 = vld [vmem:[%s1262_s1 + $0xd0] sm:$0xff]  ;;  %v226_v42 = vld [vmem:[%s996_s24 + $0x8] sm:$0xff]  ;;  %v258_v44 = vld [vmem:[%s1262_s1 + $0xf8] sm:$0xff] }
  0x30   : > { %v256_v43 = vld [vmem:[%s1262_s1 + $0xe8] sm:$0xff]  ;;  %355 = vmatprep.mubr.f32.mxu0 %v226_v42  ;;  %v679_v45 = vpack.c.bf16 %v253_v41, %v251_v40  ;;  %v255_v47 = vld [vmem:[%s1262_s1 + $0xe0] sm:$0xff]  ;;  %v257_v48 = vld [vmem:[%s1262_s1 + $0xf0] sm:$0xff] }
  0x31   : > { %v681_v46 = vpack.c.bf16 %v258_v44, %v256_v43  ;;  %v260_v49 = vld [vmem:[%s1262_s1 + $0x108] sm:$0xff]  ;;  %v262_v50 = vld [vmem:[%s1262_s1 + $0x118] sm:$0xff]  ;;  %v683_v51 = vpack.c.bf16 %v257_v48, %v255_v47  ;;  %v259_v53 = vld [vmem:[%s1262_s1 + $0x100] sm:$0xff] }
  0x32   : > { %664 = vmatpush1.bf16.msra.mxu0 %v663_v20  ;;  %v685_v52 = vpack.c.bf16 %v262_v50, %v260_v49  ;;  %v261_v54 = vld [vmem:[%s1262_s1 + $0x110] sm:$0xff]  ;;  %v264_v55 = vld [vmem:[%s1262_s1 + $0x128] sm:$0xff]  ;;  %v266_v56 = vld [vmem:[%s1262_s1 + $0x138] sm:$0xff] }
  0x33   : > { %666 = vmatprep.subr.bf16.mxu0 %v665_v21  ;;  %v687_v57 = vpack.c.bf16 %v261_v54, %v259_v53  ;;  %v689_v58 = vpack.c.bf16 %v266_v56, %v264_v55  ;;  %v263_v59 = vld [vmem:[%s1262_s1 + $0x120] sm:$0xff]  ;;  %v265_v60 = vld [vmem:[%s1262_s1 + $0x130] sm:$0xff]  ;;  %v268_v61 = vld [vmem:[%s1262_s1 + $0x148] sm:$0xff] }
  0x34   : > { %v270_v62 = vld [vmem:[%s1262_s1 + $0x158] sm:$0xff]  ;;  %v691_v63 = vpack.c.bf16 %v265_v60, %v263_v59  ;;  %v267_v1 = vld [vmem:[%s1262_s1 + $0x140] sm:$0xff]  ;;  %v269_v2 = vld [vmem:[%s1262_s1 + $0x150] sm:$0xff] }
  0x35   : > { %v693_v0 = vpack.c.bf16 %v270_v62, %v268_v61  ;;  %v272_v3 = vld [vmem:[%s1262_s1 + $0x168] sm:$0xff]  ;;  %v274_v4 = vld [vmem:[%s1262_s1 + $0x178] sm:$0xff]  ;;  %v695_v5 = vpack.c.bf16 %v269_v2, %v267_v1  ;;  %v271_v7 = vld [vmem:[%s1262_s1 + $0x160] sm:$0xff] }
  0x36   : > { %668 = vmatpush1.bf16.msra.mxu0 %v667_v26  ;;  %v697_v6 = vpack.c.bf16 %v274_v4, %v272_v3  ;;  %v273_v8 = vld [vmem:[%s1262_s1 + $0x170] sm:$0xff]  ;;  %v276_v9 = vld [vmem:[%s1262_s1 + $0x188] sm:$0xff]  ;;  %v278_v10 = vld [vmem:[%s1262_s1 + $0x198] sm:$0xff] }
  0x37   : > { %670 = vmatprep.subr.bf16.mxu0 %v669_v27  ;;  %v699_v11 = vpack.c.bf16 %v273_v8, %v271_v7  ;;  %v701_v12 = vpack.c.bf16 %v278_v10, %v276_v9  ;;  %v275_v13 = vld [vmem:[%s1262_s1 + $0x180] sm:$0xff]  ;;  %v277_v14 = vld [vmem:[%s1262_s1 + $0x190] sm:$0xff]  ;;  %v280_v15 = vld [vmem:[%s1262_s1 + $0x1a8] sm:$0xff] }
  0x38   : > { %v282_v16 = vld [vmem:[%s1262_s1 + $0x1b8] sm:$0xff]  ;;  %v703_v17 = vpack.c.bf16 %v277_v14, %v275_v13  ;;  %v279_v19 = vld [vmem:[%s1262_s1 + $0x1a0] sm:$0xff]  ;;  %v281_v20 = vld [vmem:[%s1262_s1 + $0x1b0] sm:$0xff] }
  0x39   : > { %v705_v18 = vpack.c.bf16 %v282_v16, %v280_v15  ;;  %v284_v21 = vld [vmem:[%s1262_s1 + $0x1c8] sm:$0xff]  ;;  %v286_v22 = vld [vmem:[%s1262_s1 + $0x1d8] sm:$0xff]  ;;  %v707_v23 = vpack.c.bf16 %v281_v20, %v279_v19  ;;  %v283_v25 = vld [vmem:[%s1262_s1 + $0x1c0] sm:$0xff] }
  0x3a   : > { %672 = vmatpush1.bf16.msra.mxu0 %v671_v32  ;;  %v709_v24 = vpack.c.bf16 %v286_v22, %v284_v21  ;;  %v285_v26 = vld [vmem:[%s1262_s1 + $0x1d0] sm:$0xff]  ;;  %v288_v27 = vld [vmem:[%s1262_s1 + $0x1e8] sm:$0xff]  ;;  %v290_v28 = vld [vmem:[%s1262_s1 + $0x1f8] sm:$0xff] }
  0x3b   : > { %674 = vmatprep.subr.bf16.mxu0 %v673_v33  ;;  %v711_v29 = vpack.c.bf16 %v285_v26, %v283_v25  ;;  %v713_v30 = vpack.c.bf16 %v290_v28, %v288_v27  ;;  %v287_v31 = vld [vmem:[%s1262_s1 + $0x1e0] sm:$0xff]  ;;  %v289_v32 = vld [vmem:[%s1262_s1 + $0x1f0] sm:$0xff]  ;;  %v370_v36 = vld [vmem:[#allocation3 + $0x8] sm:$0xff] }
  0x3c   : > { %v715_v33 = vpack.c.bf16 %v289_v32, %v287_v31  ;;  %v225_v34 = vld [vmem:[%s996_s24] sm:$0xff]  ;;  %v378_v42 = vld [vmem:[#allocation4 + $0x8] sm:$0xff] }
  0x3d   : > { %v369_v35 = vld [vmem:[#allocation3] sm:$0xff] }
  0x3e   : > { %676 = vmatpush1.bf16.msra.mxu0 %v675_v38  ;;  %v377_v38 = vld [vmem:[#allocation4] sm:$0xff] }
  0x3f   : > { %678 = vmatprep.subr.bf16.mxu0 %v677_v39 }
  0x42   : > { %680 = vmatpush1.bf16.msra.mxu0 %v679_v45 }
  0x43   : > { %682 = vmatprep.subr.bf16.mxu0 %v681_v46 }
  0x46   : > { %684 = vmatpush1.bf16.msra.mxu0 %v683_v51 }
  0x47   : > { %686 = vmatprep.subr.bf16.mxu0 %v685_v52 }
  0x4a   : > { %688 = vmatpush1.bf16.msra.mxu0 %v687_v57 }
  0x4b   : > { %690 = vmatprep.subr.bf16.mxu0 %v689_v58 }
  0x4e   : > { %692 = vmatpush1.bf16.msra.mxu0 %v691_v63 }
  0x4f   : > { %694 = vmatprep.subr.bf16.mxu0 %v693_v0 }
  0x52   : > { %696 = vmatpush1.bf16.msra.mxu0 %v695_v5 }
  0x53   : > { %698 = vmatprep.subr.bf16.mxu0 %v697_v6 }
  0x56   : > { %700 = vmatpush1.bf16.msra.mxu0 %v699_v11 }
  0x57   : > { %702 = vmatprep.subr.bf16.mxu0 %v701_v12 }
  0x5a   : > { %704 = vmatpush1.bf16.msra.mxu0 %v703_v17 }
  0x5b   : > { %706 = vmatprep.subr.bf16.mxu0 %v705_v18 }
  0x5e   : > { %708 = vmatpush1.bf16.msra.mxu0 %v707_v23 }
  0x5f   : > { %710 = vmatprep.subr.bf16.mxu0 %v709_v24 }
  0x62   : > { %712 = vmatpush1.bf16.msra.mxu0 %v711_v29 }
  0x63   : > { %714 = vmatprep.subr.bf16.mxu0 %v713_v30 }
  0x66   : > { %716 = vmatpush1.bf16.msra.mxu0 %v715_v33 }
  0x69   : > { %356 = vmatmul.mubr.f32.vlgmr.msra.gmra.mrb[0].mxu0 %v225_v34 }
 0x13c   : > { %v357_v37 = vpop.f32.mrb[0].mxu0 }
 0x13d   : > { %v373_v39 = vadd.f32 %v369_v35, %v357_v37  ;;  %v379_v40 = vmul.f32 %v357_v37, %v357_v37  ;;  %v359_v41 = vpop.f32.mrb[1].mxu0  ;;  %367 = vst [vmem:[%s366_s4] sm:$0xff] %v357_v37 }
 0x13e   : > { %368 = vst [vmem:[%s366_s4 + $0x8] sm:$0xff] %v359_v41  ;;  %v374_v43 = vadd.f32 %v370_v36, %v359_v41  ;;  %v380_v44 = vmul.f32 %v359_v41, %v359_v41 }
 0x13f   : > { %375 = vst [vmem:[#allocation3] sm:$0xff] %v373_v39  ;;  %v383_v45 = vadd.f32 %v379_v40, %v377_v38 }
 0x140   : > { %376 = vst [vmem:[#allocation3 + $0x8] sm:$0xff] %v374_v43  ;;  %v384_v46 = vadd.f32 %v380_v44, %v378_v42 }
 0x141   : > { %385 = vst [vmem:[#allocation4] sm:$0xff] %v383_v45 }
 0x142   : > { %386 = vst [vmem:[#allocation4 + $0x8] sm:$0xff] %v384_v46 }
 0x143 PF: > { %p640_p1 = scmp.ne.s32.totalorder %s877_s16, 1 }
 0x144   : > { %p641_p2 = scmp.ne.s32.totalorder (!%p640_p1), %s873_s15, 0 }
 0x145   : > { %390 = sbr.rel (%p640_p1) target bundleno = 403 (0x193), region = 44 }
 0x14c   : > { %394 = sbr.rel (%p641_p2) target bundleno = 388 (0x184), region = 48  ;;  %v395_v47 = vld [vmem:[#allocation3] sm:$0xff] (!%p641_p2)  ;;  %v396_v48 = vld [vmem:[#allocation3 + $0x8] sm:$0xff] (!%p641_p2)  ;;  %v409_v49 = vld [vmem:[#allocation4] sm:$0xff] (!%p641_p2)  ;;  %v892_v21 = vmov (!%p641_p2), 1983009808   ;;  %v442_v23 = vlaneseq (!%p641_p2) }
 0x14d   : > { %v397_v50 = vrot.slane (!%p641_p2), %v395_v47, 4  ;;  %v403_v51 = vrot.slane (!%p641_p2), %v396_v48, 4  ;;  %v410_v52 = vld [vmem:[#allocation4 + $0x8] sm:$0xff] (!%p641_p2)  ;;  %v411_v53 = vrot.slane (!%p641_p2), %v409_v49, 4  ;;  %v440_v22 = vunpack.c.l.s4 (!%p641_p2), %v892_v21  ;;  %v431_v33 = vld [vmem:[%s1263_s2] sm:$0xf] (!%p641_p2) }
 0x14e   : > { %v417_v54 = vrot.slane (!%p641_p2), %v410_v52, 4  ;;  %v443_v25 = vshrl.u32 (!%p641_p2), %v442_v23, 7  ;;  %v893_v26 = vmov (!%p641_p2), 1966171168   ;;  %vm459_vm0 = vcmp.lt.s32.totalorder (!%p641_p2), %v442_v23, 256 }
 0x14f   : > { %v398_v55 = vadd.f32 (!%p641_p2), %v397_v50, %v395_v47  ;;  %v404_v56 = vadd.f32 (!%p641_p2), %v403_v51, %v396_v48  ;;  %v412_v57 = vadd.f32 (!%p641_p2), %v411_v53, %v409_v49  ;;  %v441_v24 = vunpack.c.0.s8 (!%p641_p2), %v440_v22 }
 0x150   : > { %v418_v58 = vadd.f32 (!%p641_p2), %v417_v54, %v410_v52  ;;  %v450_v27 = vunpack.c.l.s4 (!%p641_p2), %v893_v26  ;;  %v464_v35 = vsub.s32 (!%p641_p2), 0, %v443_v25  ;;  %v468_v36 = vsub.s32 (!%p641_p2), 2, %v443_v25 }
 0x151   : > { %v399_v59 = vrot.slane (!%p641_p2), %v398_v55, 2  ;;  %v405_v60 = vrot.slane (!%p641_p2), %v404_v56, 2  ;;  %v413_v61 = vrot.slane (!%p641_p2), %v412_v57, 2  ;;  %v444_v29 = vsub.s32 (!%p641_p2), %v441_v24, %v443_v25 }
 0x152   : > { %v419_v62 = vrot.slane (!%p641_p2), %v418_v58, 2  ;;  %v451_v32 = vunpack.c.0.s8 (!%p641_p2), %v450_v27 }
 0x153   : > { %v400_v63 = vadd.f32 %v399_v59, %v398_v55  ;;  %v406_v0 = vadd.f32 %v405_v60, %v404_v56  ;;  %v414_v1 = vadd.f32 %v413_v61, %v412_v57 }
 0x154   : > { %v420_v2 = vadd.f32 %v419_v62, %v418_v58  ;;  %v454_v38 = vsub.s32 %v451_v32, %v443_v25 }
 0x155   : > { %v401_v3 = vrot.slane %v400_v63, 1  ;;  %v407_v4 = vrot.slane %v406_v0, 1  ;;  %v415_v5 = vrot.slane %v414_v1, 1 }
 0x156   : > { %v421_v6 = vrot.slane %v420_v2, 1 }
 0x157   : > { %v402_v7 = vadd.f32 %v401_v3, %v400_v63  ;;  %v408_v8 = vadd.f32 %v407_v4, %v406_v0  ;;  %v416_v9 = vadd.f32 %v415_v5, %v414_v1 }
 0x158   : > { %v422_v10 = vadd.f32 %v421_v6, %v420_v2 }
 0x159   : > { %v423_v11 = vmul.f32 0.03125, %v402_v7  ;;  %v424_v12 = vmul.f32 0.03125, %v408_v8  ;;  %v425_v13 = vmul.f32 0.03125, %v416_v9 }
 0x15a   : > { %v426_v14 = vmul.f32 0.03125, %v422_v10 }
 0x15b   : > { %v427_v15 = vmul.f32 %v423_v11, %v423_v11  ;;  %v428_v16 = vmul.f32 %v424_v12, %v424_v12 }
 0x15d   : > { %v429_v17 = vsub.f32 %v425_v13, %v427_v15  ;;  %v430_v18 = vsub.f32 %v426_v14, %v428_v16 }
 0x15f   : > { %v432_v19 = vadd.f32 1e-05, %v429_v17  ;;  %v433_v20 = vadd.f32 1e-05, %v430_v18 }
 0x161   : > { %791 = vrsqrt.f32 %v432_v19 }
 0x162   : > { %793 = vrsqrt.f32 %v433_v20 }
 0x16b   : > { %v792_v28 = vpop.eup %791 }
 0x16c   : > { %v794_v30 = vpop.eup %793 }
 0x16d   : > { %v438_v31 = vcombine.low %v792_v28, %v794_v30 }
 0x16f   : > { %v445_v34 = vrot.slane %v438_v31, %v444_v29 }
 0x171   : > { %v447_v37 = vmul.f32 %v445_v34, %v431_v33 }
 0x173   : > { %v455_v39 = vrot.slane %v447_v37, %v454_v38  ;;  %v465_v40 = vrot.slane %v447_v37, %v464_v35  ;;  %v469_v41 = vrot.slane %v447_v37, %v468_v36 }
 0x175   : > { %461 = vst.msk [vmem:[#allocation5] sm:$0x3] %vm459_vm0, %v455_v39  ;;  %v472_v42 = vmul.f32 %v465_v40, %v423_v11  ;;  %v473_v43 = vmul.f32 %v469_v41, %v424_v12 }
 0x177   : > { %v476_v44 = vcombine.low %v472_v42, %v473_v43 }
 0x179   : > { %v483_v45 = vrot.slane %v476_v44, %v444_v29 }
 0x17b   : > { %v484_v46 = vrot.slane %v483_v45, 7 }
 0x17d   : > { %v486_v47 = vsub.f32 %v431_v33, %v484_v46 }
 0x17f   : > { %v494_v48 = vrot.slane %v486_v47, %v454_v38 }
 0x181   : > { %v495_v49 = vcombine.high %v494_v48, %v494_v48 }
 0x183   : > { %497 = vst.msk [vmem:[#allocation6] sm:$0x3] %vm459_vm0, %v495_v49 }
 0x184 PF: > { %s498_s28 = sshra.s32 %s635_s9, 3  ;;  %v507_v50 = vlaneseq  ;;  %v505_v52 = vld [vmem:[#allocation5] sm:$0x3] }
 0x185   : > { %s651_s29 = sshll.u32 %s498_s28, 4 }
 0x186   : > { %v508_v51 = vshrl.u32 %v507_v50, 7  ;;  %s502_s5 = scalar_lea.vmem [#allocation2], %s651_s29 }
 0x187   : > { %v503_v56 = vld [vmem:[%s502_s5] sm:$0xff]  ;;  %v504_v57 = vld [vmem:[%s502_s5 + $0x8] sm:$0xff] }
 0x188   : > { %v509_v54 = vsub.s32 0, %v508_v51  ;;  %v513_v55 = vsub.s32 1, %v508_v51 }
 0x18a   : > { %v519_v53 = vld [vmem:[#allocation6] sm:$0x3]  ;;  %v510_v58 = vrot.slane %v505_v52, %v509_v54  ;;  %v514_v60 = vrot.slane %v505_v52, %v513_v55 }
 0x18b   : > { %v524_v59 = vrot.slane %v519_v53, %v509_v54  ;;  %v528_v61 = vrot.slane %v519_v53, %v513_v55 }
 0x18c   : > { %v517_v62 = vmul.f32 %v510_v58, %v503_v56  ;;  %v518_v63 = vmul.f32 %v514_v60, %v504_v57 }
 0x18e   : > { %v531_v0 = vadd.f32 %v524_v59, %v517_v62  ;;  %v532_v1 = vadd.f32 %v528_v61, %v518_v63 }
 0x190   : > { %v533_v2 = vmax.f32 %v531_v0, 0.0  ;;  %v534_v3 = vmax.f32 %v532_v1, 0.0 }
 0x192   : > { %535 = vst [vmem:[%s998_s27] sm:$0xff] %v533_v2  ;;  %536 = vst [vmem:[%s998_s27 + $0x8] sm:$0xff] %v534_v3 }
 0x193 PF: > { %s545_s9 = smul.u32 %s873_s15, %s877_s16  ;;  %s553_s7 = sshll.u32 %s998_s27, 4  ;;  %s1210_s7 = int_to_ptr.vmem [resolvable:$true] %s553_s7 }
 0x194   : > { %s1268_s20 = sand.u32 1, %s865_s13   ;;  %s795_s24 = scalar_lea.vmem %s1210_s7, 256 }
 0x195   : > { %s652_s6 = sshll.u32 %s545_s9, 8  ;;  %s538_s4 = scalar_lea.sflag [#allocation8], %s1268_s20 }
 0x196   : > { %s551_s11 = scalar_lea.hbm %s1264_s3, %s652_s6  ;;  %p796_p3 = scmp.ne.s32.totalorder %s1210_s7, %s795_s24 }
 0x197   : > { %s894_s21 = smov [#allocation7]  }
 0x198   : > { %p797_p4 = pnand %p796_p3, %p968_p6  ;;  %s799_s15 = sshll.u32 %s894_s21, 4  ;;  %s800_s15 = int_to_ptr.vmem [resolvable:$false] %s799_s15 }
 0x199   : > { %s801_s16 = scalar_lea.vmem %s800_s15, 512  ;;  %p802_p7 = scmp.lt.s32.totalorder %s1210_s7, %s800_s15 }
 0x19a   : > { %p798_p5 = pneg %p797_p4  ;;  %p803_p9 = scmp.lt.s32.totalorder %s801_s16, %s795_s24 }
 0x19c   : > { %p804_p10 = por %p803_p9, %p802_p7 }
 0x19e   : > { %p805_p11 = pnand %p804_p10, %p798_p5 }
 0x1a0   : > { %808 = shalt.err (!%p805_p11)
}
 0x1a1   : > { %s809_s27 = scalar_lea.hbm %s551_s11, 256  ;;  %s813_s5 = scalar_lea.hbm %s1264_s3, 1024 }
 0x1a2   : > { %p810_p12 = scmp.ne.s32.totalorder %s551_s11, %s809_s27  ;;  %p814_p1 = scmp.lt.u32.totalorder %s551_s11, %s1264_s3 }
 0x1a3   : > { %p815_p2 = scmp.lt.u32.totalorder %s813_s5, %s809_s27  ;;  %p817_p4 = scmp.lt.u32.totalorder %s809_s27, %s551_s11 }
 0x1a4   : > { %p811_p13 = pnand %p810_p12, %p968_p6 }
 0x1a5   : > { %p816_p3 = por %p815_p2, %p814_p1 }
 0x1a6   : > { %p812_p0 = pneg %p811_p13 }
 0x1a7   : > { %p818_p7 = por %p817_p4, %p816_p3 }
 0x1a9   : > { %p819_p5 = pnand %p818_p7, %p812_p0 }
 0x1ab   : > { %822 = shalt.err (!%p819_p5)
}
 0x1ac   : > { %717 = dma.vmem_to_hbm [thread:$0]  (%p968_p6), %s1210_s7, 256, %s551_s11, %s538_s4  }
 0x1ad PF: > { %p723_p9 = scmp.ge.s32.totalorder %s889_s19, 2  ;;  %s565_s8 = sand.u32 1, %s861_s12  }
 0x1ae   : > { %s566_s10 = scalar_lea.sflag [#allocation8], %s565_s8 }
 0x1af   : > { %p720_p10 = pnand %p723_p9, %p975_p8 }
 0x1b1   : > { %856 = dma.done.wait (!%p720_p10), %s566_s10, 256  }
 0x1b2   : > { %858 = vsyncadd (!%p720_p10), %s566_s10, 4294967040  ;;  %s16_s19 = sadd.s32 1, %s889_s19   ;;  %s1269_s12 = smov %s865_s13 }
 0x1b3   : > { %p13_p11 = scmp.ge.s32.totalorder %s16_s19, 10   ;;  %s1270_s13 = smov %s869_s14 }
 0x1b4   : > { %s1271_s14 = smov %s984_s30  ;;  %s1272_s15 = smov %s881_s17 }
 0x1b5   : > { %s1273_s16 = smov %s885_s18  ;;  %s1274_s17 = smov %s1277_s22 }
 0x1b6   : > { %s1275_s18 = smov %s1281_s23  ;;  %15 = sbr.rel (!%p13_p11) target bundleno = 5 (0x5), region = 85 }
 0x1bd   :  { %571 = vsyncpa [#allocation8], 1 }
 0x1be   :  { %573 = vsyncpa [#allocation8 + $0x1], 1 }

</bundles_post_ra>
